<compile_context>
chip_gen: v5e
topology: v5e:2x2
jax: 0.10.0
libtpu: 0.0.40
codegen_flags: <defaults>
</compile_context>

<pallas_src>
import functools

import jax
import jax.numpy as jnp
from jax.experimental import pallas as pl
from jax.experimental.pallas import tpu as pltpu

_LANE = 128  # TPU lane width


def _split_mean_sigma_kernel(x_ref, mean_ref, sigma_ref):
    # x_ref:     (2, TS, 128)  -- channels 0 (mean) and 1 (sigma), lane-dense rows
    # mean_ref:  (TS, 128)
    # sigma_ref: (TS, 128)
    mean_ref[...] = x_ref[0]
    sigma_ref[...] = x_ref[1]


@functools.partial(jax.jit, static_argnames=("tile_rows",))
def split_uncertainty(x, tile_rows=2048):
    """x: (N, C, H, W) with C >= 2. Returns (mean, sigma), each (N, 1, H, W)."""
    N, C, H, W = x.shape
    if C < 2:
        raise ValueError(f"UncertaintyProcessor needs C >= 2 channels, got C={C}")

    HW = H * W
    S = pl.cdiv(HW, _LANE)          # number of 128-lane rows per channel plane
    pad = S * _LANE - HW

    # Free reshape for contiguous NCHW; pad only if H*W is not a multiple of 128.
    xf = x.reshape(N, C, HW)
    if pad:
        xf = jnp.pad(xf, ((0, 0), (0, 0), (0, pad)))
    xr = xf.reshape(N, C, S, _LANE)

    # Sublane-row tile: full extent if small, else a large multiple of 8.
    TS = S if S < tile_rows else tile_rows
    grid = (N, pl.cdiv(S, TS))

    mean, sigma = pl.pallas_call(
        _split_mean_sigma_kernel,
        out_shape=(
            jax.ShapeDtypeStruct((N, S, _LANE), x.dtype),
            jax.ShapeDtypeStruct((N, S, _LANE), x.dtype),
        ),
        grid_spec=pltpu.PrefetchScalarGridSpec(
            num_scalar_prefetch=0,
            grid=grid,
            in_specs=[
                # Read ONLY channels 0..1 of batch n, spatial rows [t*TS, t*TS+TS).
                pl.BlockSpec((None, 2, TS, _LANE), lambda n, t: (n, 0, t, 0)),
            ],
            out_specs=[
                pl.BlockSpec((None, TS, _LANE), lambda n, t: (n, t, 0)),
                pl.BlockSpec((None, TS, _LANE), lambda n, t: (n, t, 0)),
            ],
        ),
        compiler_params=pltpu.CompilerParams(
            dimension_semantics=("parallel", "parallel"),
        ),
    )(xr)

    def _unflatten(y):
        y = y.reshape(N, S * _LANE)
        if pad:
            y = y[:, :HW]
        return y.reshape(N, 1, H, W)

    return _unflatten(mean), _unflatten(sigma)


class UncertaintyProcessor:
    """JAX/Pallas port of Trainer.models.joiner.UncertaintyProcessor."""

    def __init__(self, output_names):
        self.output_names = output_names

    def __call__(self, outputs, *args, **kwargs):
        # (original PyTorch signature is `forward(self, outputs, *kwargs)`;
        #  extra positional/keyword args are accepted and ignored, as there.)
        for output_name in self.output_names:
            if "image" in output_name:
                for output in outputs:
                    mean, sigma = split_uncertainty(output[output_name])
                    output[output_name + "_sigma"] = sigma
                    output[output_name] = mean
        return outputs


if __name__ == "__main__":
    key = jax.random.PRNGKey(0)
    N, C, H, W = 2, 4, 16, 16
    k1, k2 = jax.random.split(key)
    pred_image = jax.random.normal(k1, (N, C, H, W), dtype=jnp.float32)
    pred_depth = jax.random.normal(k2, (N, C, H, W), dtype=jnp.float32)

    outputs = [{"pred_image": pred_image, "pred_depth": pred_depth}]
    proc = UncertaintyProcessor(output_names=["pred_image", "pred_depth"])

    result = proc(outputs)
    out0 = result[0]
    jax.block_until_ready(out0["pred_image"])
    jax.block_until_ready(out0["pred_image_sigma"])

    # Reference check against plain-JAX slicing (same semantics as PyTorch).
    ref_mean = pred_image[:, 0][:, None]
    ref_sigma = pred_image[:, 1][:, None]
    assert out0["pred_image"].shape == (N, 1, H, W)
    assert out0["pred_image_sigma"].shape == (N, 1, H, W)
    assert jnp.allclose(out0["pred_image"], ref_mean)
    assert jnp.allclose(out0["pred_image_sigma"], ref_sigma)
    # 'pred_depth' has no 'image' in its name -> untouched, no sigma key.
    assert "pred_depth_sigma" not in out0
    assert out0["pred_depth"].shape == (N, C, H, W)

    print("KERNEL_OK")
</pallas_src>

<mosaic_0001>
module attributes {stable_mosaic.version = 11 : i64} {
  func.func @_split_mean_sigma_kernel(%arg0: i32, %arg1: i32, %arg2: memref<1x2x2x128xf32, #tpu.memory_space<vmem>>, %arg3: memref<1x2x128xf32, #tpu.memory_space<vmem>>, %arg4: memref<1x2x128xf32, #tpu.memory_space<vmem>>) attributes {dimension_semantics = [#tpu.dimension_semantics<parallel>, #tpu.dimension_semantics<parallel>], iteration_bounds = array<i64: 2, 1>, scalar_prefetch = 0 : i64, scratch_operands = 0 : i64, tpu.core_type = #tpu.core_type<tc>, window_params = [{transform_indices = @transform_0, window_bounds = array<i64: 1, 2, 2, 128>}, {transform_indices = @transform_1, window_bounds = array<i64: 1, 2, 128>}, {transform_indices = @transform_2, window_bounds = array<i64: 1, 2, 128>}]} {
    %c0 = arith.constant 0 : index
    %c0_0 = arith.constant 0 : index
    %c0_1 = arith.constant 0 : index
    %c0_2 = arith.constant 0 : index
    %0 = vector.load %arg2[%c0, %c0_0, %c0_1, %c0_2] : memref<1x2x2x128xf32, #tpu.memory_space<vmem>>, vector<1x1x2x128xf32>
    %1 = vector.shape_cast %0 : vector<1x1x2x128xf32> to vector<2x128xf32>
    %c0_3 = arith.constant 0 : index
    %c0_4 = arith.constant 0 : index
    %c0_5 = arith.constant 0 : index
    %2 = vector.load %arg3[%c0_3, %c0_4, %c0_5] : memref<1x2x128xf32, #tpu.memory_space<vmem>>, vector<1x2x128xf32>
    %3 = vector.shape_cast %2 : vector<1x2x128xf32> to vector<2x128xf32>
    %4 = vector.shape_cast %1 : vector<2x128xf32> to vector<1x2x128xf32>
    tpu.vector_store %arg3[%c0_3, %c0_4, %c0_5], %4 {strides = array<i32>} : memref<1x2x128xf32, #tpu.memory_space<vmem>>, vector<1x2x128xf32>,
    %c0_6 = arith.constant 0 : index
    %c1 = arith.constant 1 : index
    %c0_7 = arith.constant 0 : index
    %c0_8 = arith.constant 0 : index
    %5 = vector.load %arg2[%c0_6, %c1, %c0_7, %c0_8] : memref<1x2x2x128xf32, #tpu.memory_space<vmem>>, vector<1x1x2x128xf32>
    %6 = vector.shape_cast %5 : vector<1x1x2x128xf32> to vector<2x128xf32>
    %c0_9 = arith.constant 0 : index
    %c0_10 = arith.constant 0 : index
    %c0_11 = arith.constant 0 : index
    %7 = vector.load %arg4[%c0_9, %c0_10, %c0_11] : memref<1x2x128xf32, #tpu.memory_space<vmem>>, vector<1x2x128xf32>
    %8 = vector.shape_cast %7 : vector<1x2x128xf32> to vector<2x128xf32>
    %9 = vector.shape_cast %6 : vector<2x128xf32> to vector<1x2x128xf32>
    tpu.vector_store %arg4[%c0_9, %c0_10, %c0_11], %9 {strides = array<i32>} : memref<1x2x128xf32, #tpu.memory_space<vmem>>, vector<1x2x128xf32>,
    return
  }
  func.func @transform_0(%arg0: i32, %arg1: i32) -> (i32, i32, i32, i32) {
    %c0_i32 = arith.constant 0 : i32
    %c0_i32_0 = arith.constant 0 : i32
    %c0_i32_1 = arith.constant 0 : i32
    return %arg0, %c0_i32, %arg1, %c0_i32_0 : i32, i32, i32, i32
  }
  func.func @transform_1(%arg0: i32, %arg1: i32) -> (i32, i32, i32) {
    %c0_i32 = arith.constant 0 : i32
    %c0_i32_0 = arith.constant 0 : i32
    return %arg0, %arg1, %c0_i32 : i32, i32, i32
  }
  func.func @transform_2(%arg0: i32, %arg1: i32) -> (i32, i32, i32) {
    %c0_i32 = arith.constant 0 : i32
    %c0_i32_0 = arith.constant 0 : i32
    return %arg0, %arg1, %c0_i32 : i32, i32, i32
  }
}

</mosaic_0001>

<bundles_post_ra>
// kernel: split_uncertainty.1
= control target key start
LH: loop header
LB: loop body
LE: loop exit
PB: predicated region body
PF: predicated region fallthrough
CT: control target
= control target key end

     0   :  { %s391_s9 = smov 0   ;;  %s393_s10 = smov 0   ;;  %s415_s0 = inlined_call_operand.vmem [shape: f32[2,4,2,128], index: 0, kind: input, shape index: {}]   ;;  %s416_s1 = inlined_call_operand.vmem [shape: f32[2,2,128], index: 1, kind: output, shape index: {0}]   ;;  %s417_s2 = inlined_call_operand.vmem [shape: f32[2,2,128], index: 2, kind: output, shape index: {1}]  }
   0x1   :  { %s395_s11 = smov 0  }
   0x2 LB: > { %s25_s12 = sadd.s32 1, %s370_s10  ;;  %p319_p0 = scmp.ge.s32.totalorder %s374_s11, 1  ;;  %s374_s11 = sphi %s395_s11, %s13_s11   ;;  %s370_s10 = sphi %s393_s10, %s419_s10   ;;  %s366_s9 = sphi %s391_s9, %s418_s9  }
   0x3   : > { %p27_p1 = scmp.ge.s32.totalorder %s25_s12, 2  ;;  %p136_p2 = scmp.lt.s32.totalorder %s374_s11, 3 }
   0x5   : > { %s421_s12 = smov (%p27_p1, %s25_s12), 0  ;;  %p137_p3 = pnand %p319_p0, %p136_p2 }
   0x6   : > { %p170_p4 = scmp.lt.s32.totalorder (!%p137_p3), %s366_s9, 1 }
   0x7   : > { %140 = sbr.rel (%p137_p3) target bundleno = 18 (0x12), region = 24 }
   0xc   : > { %s423_s9 = smov (!%p170_p4, %s366_s9), 1 }
   0xd   : > { %s327_s13 = sshll.u32 %s423_s9, 3  ;;  %s322_s14 = sshll.u32 %s423_s9, 1 }
   0xe   : > { %s177_s17 = scalar_lea.vmem %s415_s0, %s327_s13  ;;  %s184_s20 = scalar_lea.vmem %s416_s1, %s322_s14 }
   0xf   : > { %v192_v0 = vld [vmem:[%s177_s17] sm:$0x3]  ;;  %s191_s23 = scalar_lea.vmem %s417_s2, %s322_s14  ;;  %v324_v1 = vld [vmem:[%s177_s17 + $0x2] sm:$0x3] }
  0x10   : > { %193 = vst [vmem:[%s184_s20] sm:$0x3] %v192_v0 }
  0x11   : > { %196 = vst [vmem:[%s191_s23] sm:$0x3] %v324_v1 }
  0x12 PF: > { %s13_s11 = sadd.s32 1, %s374_s11   ;;  %s418_s9 = smov %s370_s10 }
  0x13   : > { %p10_p5 = scmp.ge.s32.totalorder %s13_s11, 4   ;;  %s419_s10 = smov %s421_s12 }
  0x15   :  { %12 = sbr.rel (!%p10_p5) target bundleno = 2 (0x2), region = 67 }

</bundles_post_ra>
